<compile_context>
chip_gen: v5e
topology: v5e:2x2
jax: 0.10.0
libtpu: 0.0.40
codegen_flags: <defaults>
</compile_context>

<pallas_src>
import jax
import jax.numpy as jnp
from jax.experimental import pallas as pl
from jax.experimental.pallas import tpu as pltpu


# ----------------------------------- fused kernel -----------------------------------
def _cross_attn_fusion_kernel(x1_ref, x2_ref, wq_ref, bq_ref, wkv_ref, bkv_ref, o_ref):
    """out = sigmoid((x1@Wq+bq) * (x2@Wk+bk)) * (x2@Wv+bv) + x1  — one kernel."""
    x1 = x1_ref[...]                                       # (bm, dim), kept f32 for residual
    dim = x1.shape[-1]
    # bf16 MXU operands, f32 accumulation (native MXU path on v5e/v6e/v7x).
    q = jnp.dot(x1.astype(jnp.bfloat16), wq_ref[...],
                preferred_element_type=jnp.float32) + bq_ref[...]
    # single lane-dense matmul producing k|v side by side: (bm, 2*dim)
    kv = jnp.dot(x2_ref[...].astype(jnp.bfloat16), wkv_ref[...],
                 preferred_element_type=jnp.float32) + bkv_ref[...]
    k = kv[:, :dim]
    v = kv[:, dim:]
    # Elementwise chain stays f32 (VPU/EUP f32 path is v5e-safe).
    out = jax.nn.sigmoid(q * k) * v + x1.astype(jnp.float32)
    o_ref[...] = out.astype(o_ref.dtype)


# ------------------------------ one-time param packing ------------------------------
def prepare_cross_attention_fusion_params(wq, bq, wk, bk, wv, bv,
                                          *, weight_dtype=jnp.bfloat16):
    """Hoisted out of the forward: concat Wk|Wv, reshape biases, cast weights.

    Weights use the x @ W convention (a torch nn.Linear weight would be W.T).
    """
    dim = wq.shape[0]
    wkv = jnp.concatenate([wk, wv], axis=1)                # (dim, 2*dim)
    bkv = jnp.concatenate([bk, bv], axis=0)                # (2*dim,)
    return {
        "wq": wq.astype(weight_dtype),                     # (dim, dim)      bf16
        "bq": bq.reshape(1, dim).astype(jnp.float32),      # (1, dim)        f32
        "wkv": wkv.astype(weight_dtype),                   # (dim, 2*dim)    bf16
        "bkv": bkv.reshape(1, 2 * dim).astype(jnp.float32) # (1, 2*dim)      f32
    }


# ------------------------------------- wrapper --------------------------------------
def _round_up(x, m):
    return ((x + m - 1) // m) * m


def _pick_batch_tile(b, block_b):
    """Largest batch tile that fits the policy.

    Small b: one full-batch step (biggest tile, best for single-TC v5e/v6e).
    Large b (>=512): cap at ceil(b/2) rounded to the 8-sublane grain so the
    'parallel' grid axis has >=2 steps and can shard across v7x's two TCs.
    """
    bm = min(b, block_b)
    if b >= 512:
        bm = min(bm, _round_up(pl.cdiv(b, 2), 8))
    return bm


def cross_attention_fusion(x1, x2, params, *, block_b=1024):
    b, dim = x1.shape
    assert x2.shape == (b, dim), (x1.shape, x2.shape)
    bm = _pick_batch_tile(b, block_b)
    grid = (pl.cdiv(b, bm),)
    # NOTE: if b % bm != 0 the final grid step computes on padded rows; Pallas
    # masks the writeback, so padded rows never reach the output.

    def _build_and_run(weight_mode):
        x_spec = pl.BlockSpec((bm, dim), lambda i: (i, 0))

        def resident(shape):                               # same block every grid step
            if weight_mode is None:
                return pl.BlockSpec(shape, lambda i: (0, 0))
            return pl.BlockSpec(shape, lambda i: (0, 0), pipeline_mode=weight_mode)

        return pl.pallas_call(
            _cross_attn_fusion_kernel,
            out_shape=jax.ShapeDtypeStruct((b, dim), x1.dtype),
            grid=grid,
            in_specs=[x_spec, x_spec,
                      resident(params["wq"].shape), resident(params["bq"].shape),
                      resident(params["wkv"].shape), resident(params["bkv"].shape)],
            out_specs=x_spec,
            compiler_params=pltpu.CompilerParams(dimension_semantics=("parallel",)),
        )(x1, x2, params["wq"], params["bq"], params["wkv"], params["bkv"])

    try:
        # Resident weights: constant index_map -> single buffer is enough.
        return _build_and_run(pl.Buffered(1))
    except Exception:
        # Fallback if this jax build rejects single-buffered pipeline_mode here.
        return _build_and_run(None)


# ------------------------------------ reference -------------------------------------
def cross_attention_fusion_ref(x1, x2, wq, bq, wk, bk, wv, bv):
    q = jnp.dot(x1, wq, preferred_element_type=jnp.float32) + bq
    k = jnp.dot(x2, wk, preferred_element_type=jnp.float32) + bk
    v = jnp.dot(x2, wv, preferred_element_type=jnp.float32) + bv
    return jax.nn.sigmoid(q * k) * v + x1


# --------------------------------------- main ---------------------------------------
if __name__ == "__main__":
    BATCH = 8          # small sublane-aligned batch (grid collapses to 1 step)
    DIM = 128          # lane-dense feature dim (one full vreg lane width)

    root = jax.random.PRNGKey(0)
    ks = jax.random.split(root, 8)
    x1 = jax.random.normal(ks[0], (BATCH, DIM), jnp.float32)
    x2 = jax.random.normal(ks[1], (BATCH, DIM), jnp.float32)
    s = 0.1
    wq = s * jax.random.normal(ks[2], (DIM, DIM), jnp.float32)
    wk = s * jax.random.normal(ks[3], (DIM, DIM), jnp.float32)
    wv = s * jax.random.normal(ks[4], (DIM, DIM), jnp.float32)
    bq = s * jax.random.normal(ks[5], (DIM,), jnp.float32)
    bk = s * jax.random.normal(ks[6], (DIM,), jnp.float32)
    bv = s * jax.random.normal(ks[7], (DIM,), jnp.float32)

    # One-time parameter packing (NOT on the per-forward launch path).
    params = prepare_cross_attention_fusion_params(wq, bq, wk, bk, wv, bv)

    out = cross_attention_fusion(x1, x2, params)
    out = jax.block_until_ready(out)

    ref = cross_attention_fusion_ref(x1, x2, wq, bq, wk, bk, wv, bv)
    assert out.shape == (BATCH, DIM), out.shape
    assert bool(jnp.all(jnp.isfinite(out)))
    # bf16 MXU operands with f32 accumulation vs. f32 reference -> loose tolerance.
    err = float(jnp.max(jnp.abs(out - ref)))
    assert bool(jnp.allclose(out, ref, atol=3e-2, rtol=3e-2)), err
    print("KERNEL_OK")
</pallas_src>

<mosaic_0001>
module attributes {stable_mosaic.version = 11 : i64} {
  func.func @_cross_attn_fusion_kernel(%arg0: i32, %arg1: memref<8x128xf32, #tpu.memory_space<vmem>>, %arg2: memref<8x128xf32, #tpu.memory_space<vmem>>, %arg3: memref<128x128xbf16, #tpu.memory_space<vmem>>, %arg4: memref<1x128xf32, #tpu.memory_space<vmem>>, %arg5: memref<128x256xbf16, #tpu.memory_space<vmem>>, %arg6: memref<1x256xf32, #tpu.memory_space<vmem>>, %arg7: memref<8x128xf32, #tpu.memory_space<vmem>>) attributes {dimension_semantics = [#tpu.dimension_semantics<parallel>], iteration_bounds = array<i64: 1>, scalar_prefetch = 0 : i64, scratch_operands = 0 : i64, tpu.core_type = #tpu.core_type<tc>, window_params = [{transform_indices = @transform_0, window_bounds = array<i64: 8, 128>}, {transform_indices = @transform_1, window_bounds = array<i64: 8, 128>}, {pipeline_mode = #tpu.pipeline_mode<synchronous>, transform_indices = @transform_2, window_bounds = array<i64: 128, 128>}, {pipeline_mode = #tpu.pipeline_mode<synchronous>, transform_indices = @transform_3, window_bounds = array<i64: 1, 128>}, {pipeline_mode = #tpu.pipeline_mode<synchronous>, transform_indices = @transform_4, window_bounds = array<i64: 128, 256>}, {pipeline_mode = #tpu.pipeline_mode<synchronous>, transform_indices = @transform_5, window_bounds = array<i64: 1, 256>}, {transform_indices = @transform_6, window_bounds = array<i64: 8, 128>}]} {
    %c0 = arith.constant 0 : index
    %c0_0 = arith.constant 0 : index
    %0 = vector.load %arg1[%c0, %c0_0] : memref<8x128xf32, #tpu.memory_space<vmem>>, vector<8x128xf32>
    %1 = arith.truncf %0 : vector<8x128xf32> to vector<8x128xbf16>
    %c0_1 = arith.constant 0 : index
    %c0_2 = arith.constant 0 : index
    %2 = vector.load %arg3[%c0_1, %c0_2] : memref<128x128xbf16, #tpu.memory_space<vmem>>, vector<128x128xbf16>
    %cst = arith.constant dense<0.000000e+00> : vector<8x128xf32>
    %3 = tpu.matmul %1, %2, %cst {dimension_numbers = #tpu.dot_dimension_numbers<[1], [0], [0], [1], [0, 0, 1, 1], [], []>} : vector<8x128xbf16>, vector<128x128xbf16>, vector<8x128xf32> -> vector<8x128xf32>
    %c0_3 = arith.constant 0 : index
    %c0_4 = arith.constant 0 : index
    %4 = vector.load %arg4[%c0_3, %c0_4] : memref<1x128xf32, #tpu.memory_space<vmem>>, vector<1x128xf32>
    %5 = vector.broadcast %4 : vector<1x128xf32> to vector<8x128xf32>
    %6 = arith.addf %3, %5 : vector<8x128xf32>
    %c0_5 = arith.constant 0 : index
    %c0_6 = arith.constant 0 : index
    %7 = vector.load %arg2[%c0_5, %c0_6] : memref<8x128xf32, #tpu.memory_space<vmem>>, vector<8x128xf32>
    %8 = arith.truncf %7 : vector<8x128xf32> to vector<8x128xbf16>
    %c0_7 = arith.constant 0 : index
    %c0_8 = arith.constant 0 : index
    %9 = vector.load %arg5[%c0_7, %c0_8] : memref<128x256xbf16, #tpu.memory_space<vmem>>, vector<128x256xbf16>
    %cst_9 = arith.constant dense<0.000000e+00> : vector<8x256xf32>
    %10 = tpu.matmul %8, %9, %cst_9 {dimension_numbers = #tpu.dot_dimension_numbers<[1], [0], [0], [1], [0, 0, 1, 1], [], []>} : vector<8x128xbf16>, vector<128x256xbf16>, vector<8x256xf32> -> vector<8x256xf32>
    %c0_10 = arith.constant 0 : index
    %c0_11 = arith.constant 0 : index
    %11 = vector.load %arg6[%c0_10, %c0_11] : memref<1x256xf32, #tpu.memory_space<vmem>>, vector<1x256xf32>
    %12 = vector.broadcast %11 : vector<1x256xf32> to vector<8x256xf32>
    %13 = arith.addf %10, %12 : vector<8x256xf32>
    %14 = vector.extract_strided_slice %13 {offsets = [0, 0], sizes = [8, 128], strides = [1, 1]} : vector<8x256xf32> to vector<8x128xf32>
    %15 = vector.extract_strided_slice %13 {offsets = [0, 128], sizes = [8, 128], strides = [1, 1]} : vector<8x256xf32> to vector<8x128xf32>
    %16 = arith.mulf %6, %14 : vector<8x128xf32>
    %17 = arith.negf %16 : vector<8x128xf32>
    %18 = math.exp %17 : vector<8x128xf32>
    %cst_12 = arith.constant 1.000000e+00 : f32
    %19 = vector.broadcast %cst_12 : f32 to vector<8x128xf32>
    %20 = arith.addf %19, %18 : vector<8x128xf32>
    %21 = arith.divf %19, %20 : vector<8x128xf32>
    %22 = arith.mulf %21, %15 : vector<8x128xf32>
    %23 = arith.addf %22, %0 : vector<8x128xf32>
    %c0_13 = arith.constant 0 : index
    %c0_14 = arith.constant 0 : index
    %24 = vector.load %arg7[%c0_13, %c0_14] : memref<8x128xf32, #tpu.memory_space<vmem>>, vector<8x128xf32>
    tpu.vector_store %arg7[%c0_13, %c0_14], %23 {strides = array<i32>} : memref<8x128xf32, #tpu.memory_space<vmem>>, vector<8x128xf32>,
    return
  }
  func.func @transform_0(%arg0: i32) -> (i32, i32) {
    %c0_i32 = arith.constant 0 : i32
    %c0_i32_0 = arith.constant 0 : i32
    return %arg0, %c0_i32 : i32, i32
  }
  func.func @transform_1(%arg0: i32) -> (i32, i32) {
    %c0_i32 = arith.constant 0 : i32
    %c0_i32_0 = arith.constant 0 : i32
    return %arg0, %c0_i32 : i32, i32
  }
  func.func @transform_2(%arg0: i32) -> (i32, i32) {
    %c0_i32 = arith.constant 0 : i32
    %c0_i32_0 = arith.constant 0 : i32
    %c0_i32_1 = arith.constant 0 : i32
    return %c0_i32, %c0_i32_0 : i32, i32
  }
  func.func @transform_3(%arg0: i32) -> (i32, i32) {
    %c0_i32 = arith.constant 0 : i32
    %c0_i32_0 = arith.constant 0 : i32
    %c0_i32_1 = arith.constant 0 : i32
    return %c0_i32, %c0_i32_0 : i32, i32
  }
  func.func @transform_4(%arg0: i32) -> (i32, i32) {
    %c0_i32 = arith.constant 0 : i32
    %c0_i32_0 = arith.constant 0 : i32
    %c0_i32_1 = arith.constant 0 : i32
    return %c0_i32, %c0_i32_0 : i32, i32
  }
  func.func @transform_5(%arg0: i32) -> (i32, i32) {
    %c0_i32 = arith.constant 0 : i32
    %c0_i32_0 = arith.constant 0 : i32
    %c0_i32_1 = arith.constant 0 : i32
    return %c0_i32, %c0_i32_0 : i32, i32
  }
  func.func @transform_6(%arg0: i32) -> (i32, i32) {
    %c0_i32 = arith.constant 0 : i32
    %c0_i32_0 = arith.constant 0 : i32
    return %arg0, %c0_i32 : i32, i32
  }
}

module attributes {stable_mosaic.version = 11 : i64} {
  func.func @_cross_attn_fusion_kernel(%arg0: i32, %arg1: memref<8x128xf32, #tpu.memory_space<vmem>>, %arg2: memref<8x128xf32, #tpu.memory_space<vmem>>, %arg3: memref<128x128xbf16, #tpu.memory_space<vmem>>, %arg4: memref<1x128xf32, #tpu.memory_space<vmem>>, %arg5: memref<128x256xbf16, #tpu.memory_space<vmem>>, %arg6: memref<1x256xf32, #tpu.memory_space<vmem>>, %arg7: memref<8x128xf32, #tpu.memory_space<vmem>>) attributes {dimension_semantics = [#tpu.dimension_semantics<parallel>], iteration_bounds = array<i64: 1>, scalar_prefetch = 0 : i64, scratch_operands = 0 : i64, tpu.core_type = #tpu.core_type<tc>, window_params = [{transform_indices = @transform_0, window_bounds = array<i64: 8, 128>}, {transform_indices = @transform_1, window_bounds = array<i64: 8, 128>}, {pipeline_mode = #tpu.pipeline_mode<synchronous>, transform_indices = @transform_2, window_bounds = array<i64: 128, 128>}, {pipeline_mode = #tpu.pipeline_mode<synchronous>, transform_indices = @transform_3, window_bounds = array<i64: 1, 128>}, {pipeline_mode = #tpu.pipeline_mode<synchronous>, transform_indices = @transform_4, window_bounds = array<i64: 128, 256>}, {pipeline_mode = #tpu.pipeline_mode<synchronous>, transform_indices = @transform_5, window_bounds = array<i64: 1, 256>}, {transform_indices = @transform_6, window_bounds = array<i64: 8, 128>}]} {
    %c0 = arith.constant 0 : index
    %c0_0 = arith.constant 0 : index
    %0 = vector.load %arg1[%c0, %c0_0] : memref<8x128xf32, #tpu.memory_space<vmem>>, vector<8x128xf32>
    %1 = arith.truncf %0 : vector<8x128xf32> to vector<8x128xbf16>
    %c0_1 = arith.constant 0 : index
    %c0_2 = arith.constant 0 : index
    %2 = vector.load %arg3[%c0_1, %c0_2] : memref<128x128xbf16, #tpu.memory_space<vmem>>, vector<128x128xbf16>
    %cst = arith.constant dense<0.000000e+00> : vector<8x128xf32>
    %3 = tpu.matmul %1, %2, %cst {dimension_numbers = #tpu.dot_dimension_numbers<[1], [0], [0], [1], [0, 0, 1, 1], [], []>} : vector<8x128xbf16>, vector<128x128xbf16>, vector<8x128xf32> -> vector<8x128xf32>
    %c0_3 = arith.constant 0 : index
    %c0_4 = arith.constant 0 : index
    %4 = vector.load %arg4[%c0_3, %c0_4] : memref<1x128xf32, #tpu.memory_space<vmem>>, vector<1x128xf32>
    %5 = vector.broadcast %4 : vector<1x128xf32> to vector<8x128xf32>
    %6 = arith.addf %3, %5 : vector<8x128xf32>
    %c0_5 = arith.constant 0 : index
    %c0_6 = arith.constant 0 : index
    %7 = vector.load %arg2[%c0_5, %c0_6] : memref<8x128xf32, #tpu.memory_space<vmem>>, vector<8x128xf32>
    %8 = arith.truncf %7 : vector<8x128xf32> to vector<8x128xbf16>
    %c0_7 = arith.constant 0 : index
    %c0_8 = arith.constant 0 : index
    %9 = vector.load %arg5[%c0_7, %c0_8] : memref<128x256xbf16, #tpu.memory_space<vmem>>, vector<128x256xbf16>
    %cst_9 = arith.constant dense<0.000000e+00> : vector<8x256xf32>
    %10 = tpu.matmul %8, %9, %cst_9 {dimension_numbers = #tpu.dot_dimension_numbers<[1], [0], [0], [1], [0, 0, 1, 1], [], []>} : vector<8x128xbf16>, vector<128x256xbf16>, vector<8x256xf32> -> vector<8x256xf32>
    %c0_10 = arith.constant 0 : index
    %c0_11 = arith.constant 0 : index
    %11 = vector.load %arg6[%c0_10, %c0_11] : memref<1x256xf32, #tpu.memory_space<vmem>>, vector<1x256xf32>
    %12 = vector.broadcast %11 : vector<1x256xf32> to vector<8x256xf32>
    %13 = arith.addf %10, %12 : vector<8x256xf32>
    %14 = vector.extract_strided_slice %13 {offsets = [0, 0], sizes = [8, 128], strides = [1, 1]} : vector<8x256xf32> to vector<8x128xf32>
    %15 = vector.extract_strided_slice %13 {offsets = [0, 128], sizes = [8, 128], strides = [1, 1]} : vector<8x256xf32> to vector<8x128xf32>
    %16 = arith.mulf %6, %14 : vector<8x128xf32>
    %17 = arith.negf %16 : vector<8x128xf32>
    %18 = math.exp %17 : vector<8x128xf32>
    %cst_12 = arith.constant 1.000000e+00 : f32
    %19 = vector.broadcast %cst_12 : f32 to vector<8x128xf32>
    %20 = arith.addf %19, %18 : vector<8x128xf32>
    %21 = arith.divf %19, %20 : vector<8x128xf32>
    %22 = arith.mulf %21, %15 : vector<8x128xf32>
    %23 = arith.addf %22, %0 : vector<8x128xf32>
    %c0_13 = arith.constant 0 : index
    %c0_14 = arith.constant 0 : index
    %24 = vector.load %arg7[%c0_13, %c0_14] : memref<8x128xf32, #tpu.memory_space<vmem>>, vector<8x128xf32>
    tpu.vector_store %arg7[%c0_13, %c0_14], %23 {strides = array<i32>} : memref<8x128xf32, #tpu.memory_space<vmem>>, vector<8x128xf32>,
    return
  }
  func.func @transform_0(%arg0: i32) -> (i32, i32) {
    %c0_i32 = arith.constant 0 : i32
    %c0_i32_0 = arith.constant 0 : i32
    return %arg0, %c0_i32 : i32, i32
  }
  func.func @transform_1(%arg0: i32) -> (i32, i32) {
    %c0_i32 = arith.constant 0 : i32
    %c0_i32_0 = arith.constant 0 : i32
    return %arg0, %c0_i32 : i32, i32
  }
  func.func @transform_2(%arg0: i32) -> (i32, i32) {
    %c0_i32 = arith.constant 0 : i32
    %c0_i32_0 = arith.constant 0 : i32
    %c0_i32_1 = arith.constant 0 : i32
    return %c0_i32, %c0_i32_0 : i32, i32
  }
  func.func @transform_3(%arg0: i32) -> (i32, i32) {
    %c0_i32 = arith.constant 0 : i32
    %c0_i32_0 = arith.constant 0 : i32
    %c0_i32_1 = arith.constant 0 : i32
    return %c0_i32, %c0_i32_0 : i32, i32
  }
  func.func @transform_4(%arg0: i32) -> (i32, i32) {
    %c0_i32 = arith.constant 0 : i32
    %c0_i32_0 = arith.constant 0 : i32
    %c0_i32_1 = arith.constant 0 : i32
    return %c0_i32, %c0_i32_0 : i32, i32
  }
  func.func @transform_5(%arg0: i32) -> (i32, i32) {
    %c0_i32 = arith.constant 0 : i32
    %c0_i32_0 = arith.constant 0 : i32
    %c0_i32_1 = arith.constant 0 : i32
    return %c0_i32, %c0_i32_0 : i32, i32
  }
  func.func @transform_6(%arg0: i32) -> (i32, i32) {
    %c0_i32 = arith.constant 0 : i32
    %c0_i32_0 = arith.constant 0 : i32
    return %arg0, %c0_i32 : i32, i32
  }
}

</mosaic_0001>

<bundles_post_ra>
// kernel: tpu_custom_call.1
= control target key start
LH: loop header
LB: loop body
LE: loop exit
PB: predicated region body
PF: predicated region fallthrough
CT: control target
= control target key end

     0   :  { %11 = vsyncpa [#allocation3], 0  ;;  %s666_s0 = inlined_call_operand.hbm [shape: f32[8,128], index: 0, kind: input, shape index: {}]   ;;  %s667_s1 = inlined_call_operand.hbm [shape: f32[8,128], index: 1, kind: input, shape index: {}]   ;;  %s668_s2 = inlined_call_operand.hbm [shape: bf16[128,128], index: 2, kind: input, shape index: {}]   ;;  %s669_s3 = inlined_call_operand.vmem [shape: f32[1,128], index: 3, kind: input, shape index: {}]   ;;  %s670_s4 = inlined_call_operand.hbm [shape: bf16[128,256], index: 4, kind: input, shape index: {}]   ;;  %s671_s5 = inlined_call_operand.vmem [shape: f32[1,256], index: 5, kind: input, shape index: {}]   ;;  %s672_s6 = inlined_call_operand.hbm [shape: f32[8,128], index: 6, kind: output, shape index: {}]  }
   0x1   :  { %12 = vsyncpa [#allocation6], 0 }
   0x2   :  { %13 = vsyncpa [#allocation9], 0  ;;  %s31_s23 = sshll.u32 %s667_s1, 4  ;;  %s32_s23 = int_to_ptr.hbm [resolvable:$true] %s31_s23 }
   0x3   :  { %14 = vsyncpa [#allocation4], 0  ;;  %s601_s24 = smov [#allocation5]   ;;  %s20_s28 = sshll.u32 %s666_s0, 4  ;;  %s21_s28 = int_to_ptr.hbm [resolvable:$true] %s20_s28 }
   0x4   :  { %s33_s25 = sshll.u32 %s601_s24, 4  ;;  %s602_s29 = smov [#allocation2]   ;;  %s34_s25 = int_to_ptr.vmem [resolvable:$true] %s33_s25 }
   0x5   :  { %36 = dma.hbm_to_vmem [thread:$0]  %s32_s23, 128, %s34_s25, [#allocation6]  }
   0x6   :  { %s22_s30 = sshll.u32 %s602_s29, 4  ;;  %s41_s9 = sshll.u32 %s668_s2, 4  ;;  %s23_s30 = int_to_ptr.vmem [resolvable:$true] %s22_s30  ;;  %s42_s9 = int_to_ptr.hbm [resolvable:$true] %s41_s9 }
   0x7   :  { %25 = dma.hbm_to_vmem [thread:$0]  %s21_s28, 128, %s23_s30, [#allocation3]  }
   0x8   :  { %s603_s1 = smov [#allocation7]   ;;  %s56_s13 = sshll.u32 %s670_s4, 4  ;;  %s57_s13 = int_to_ptr.hbm [resolvable:$true] %s56_s13 }
   0x9   :  { %s43_s10 = sshll.u32 %s603_s1, 4  ;;  %s604_s14 = smov 64   ;;  %s44_s10 = int_to_ptr.vmem [resolvable:$true] %s43_s10 }
   0xa   :  { %s605_s0 = smov 4   ;;  %s606_s15 = smov [#allocation8]  }
   0xb   :  { %49 = dma.hbm_to_vmem [thread:$0]  %s42_s9, 1024, %s44_s10, [#allocation6], %s604_s14, %s604_s14, %s605_s0  }
   0xc   :  { %s58_s16 = sshll.u32 %s606_s15, 4  ;;  %s607_s17 = smov 128   ;;  %s59_s16 = int_to_ptr.vmem [resolvable:$true] %s58_s16 }
   0xd   :  { %s608_s18 = smov 8  }
   0xe   :  { %64 = dma.hbm_to_vmem [thread:$0]  %s57_s13, 2048, %s59_s16, [#allocation9], %s607_s17, %s607_s17, %s608_s18  }
   0xf   :  { %593 = dma.done.wait [#allocation3], 128  }
  0x10   :  { %594 = vsyncadd [#allocation3], 4294967168 }
  0x11   :  { %595 = dma.done.wait [#allocation6], 1152  }
  0x12   :  { %596 = vsyncadd [#allocation6], 4294966144 }
  0x13   :  { %597 = dma.done.wait [#allocation9], 2048  }
  0x14   :  { %598 = vsyncadd [#allocation9], 4294965248  ;;  %v442_v0 = vld [vmem:[#allocation7 + $0x38] sm:$0xff]  ;;  %v428_v1 = vld [vmem:[#allocation8 + $0x70] sm:$0xf]  ;;  %s326_s23 = sshll.u32 %s672_s6, 4  ;;  %s327_s23 = int_to_ptr.hbm [resolvable:$true] %s326_s23 }
  0x15   :  { %v458_v2 = vld [vmem:[#allocation8 + $0x74] sm:$0xf0]  ;;  %v420_v4 = vld [vmem:[#allocation8 + $0x60] sm:$0xf]  ;;  %v456_v5 = vld [vmem:[#allocation8 + $0x64] sm:$0xf0]  ;;  %153 = vmatpush.bf16.msra.mxu0 %v442_v0 }
  0x16   :  { %v429_v3 = vor.u32 %v458_v2, %v428_v1  ;;  %v441_v6 = vld [vmem:[#allocation7 + $0x30] sm:$0xff]  ;;  %v421_v7 = vor.u32 %v456_v5, %v420_v4  ;;  %v454_v9 = vld [vmem:[#allocation8 + $0x54] sm:$0xf0]  ;;  %v430_v11 = vld [vmem:[#allocation8 + $0x78] sm:$0xf0] }
  0x17   :  { %v412_v8 = vld [vmem:[#allocation8 + $0x50] sm:$0xf]  ;;  %v457_v10 = vld [vmem:[#allocation8 + $0x74] sm:$0xf]  ;;  %v440_v12 = vld [vmem:[#allocation7 + $0x28] sm:$0xff] }
  0x18   :  { %270 = vmatpush.bf16.msra.mxu1 %v429_v3  ;;  %v433_v13 = vor.u32 %v457_v10, %v430_v11  ;;  %v455_v14 = vld [vmem:[#allocation8 + $0x64] sm:$0xf]  ;;  %v413_v15 = vor.u32 %v454_v9, %v412_v8  ;;  %v422_v16 = vld [vmem:[#allocation8 + $0x68] sm:$0xf0]  ;;  %v404_v17 = vld [vmem:[#allocation8 + $0x40] sm:$0xf] }
  0x19   :  { %154 = vmatpush.bf16.msra.mxu0 %v441_v6  ;;  %v452_v18 = vld [vmem:[#allocation8 + $0x44] sm:$0xf0]  ;;  %v425_v19 = vor.u32 %v455_v14, %v422_v16  ;;  %v453_v20 = vld [vmem:[#allocation8 + $0x54] sm:$0xf]  ;;  %v414_v21 = vld [vmem:[#allocation8 + $0x58] sm:$0xf0] }
  0x1a   :  { %283 = vmatpush.bf16.msra.mxu2 %v433_v13  ;;  %v439_v22 = vld [vmem:[#allocation7 + $0x20] sm:$0xff]  ;;  %v405_v23 = vor.u32 %v452_v18, %v404_v17  ;;  %v396_v24 = vld [vmem:[#allocation8 + $0x30] sm:$0xf]  ;;  %v450_v25 = vld [vmem:[#allocation8 + $0x34] sm:$0xf0]  ;;  %v417_v26 = vor.u32 %v453_v20, %v414_v21 }
  0x1b   :  { %v451_v27 = vld [vmem:[#allocation8 + $0x44] sm:$0xf]  ;;  %v406_v28 = vld [vmem:[#allocation8 + $0x48] sm:$0xf0]  ;;  %v438_v29 = vld [vmem:[#allocation7 + $0x18] sm:$0xff]  ;;  %v397_v30 = vor.u32 %v450_v25, %v396_v24 }
  0x1c   :  { %271 = vmatpush.bf16.msra.mxu1 %v421_v7  ;;  %v388_v31 = vld [vmem:[#allocation8 + $0x20] sm:$0xf]  ;;  %v448_v32 = vld [vmem:[#allocation8 + $0x24] sm:$0xf0]  ;;  %v409_v33 = vor.u32 %v451_v27, %v406_v28  ;;  %v449_v34 = vld [vmem:[#allocation8 + $0x34] sm:$0xf] }
  0x1d   :  { %155 = vmatpush.bf16.msra.mxu0 %v440_v12  ;;  %v398_v35 = vld [vmem:[#allocation8 + $0x38] sm:$0xf0]  ;;  %v437_v36 = vld [vmem:[#allocation7 + $0x10] sm:$0xff]  ;;  %v389_v37 = vor.u32 %v448_v32, %v388_v31  ;;  %v446_v39 = vld [vmem:[#allocation8 + $0x14] sm:$0xf0] }
  0x1e   :  { %284 = vmatpush.bf16.msra.mxu2 %v425_v19  ;;  %v380_v38 = vld [vmem:[#allocation8 + $0x10] sm:$0xf]  ;;  %v401_v40 = vor.u32 %v449_v34, %v398_v35  ;;  %v447_v41 = vld [vmem:[#allocation8 + $0x24] sm:$0xf]  ;;  %v390_v42 = vld [vmem:[#allocation8 + $0x28] sm:$0xf0] }
  0x1f   :  { %v436_v43 = vld [vmem:[#allocation7 + $0x8] sm:$0xff]  ;;  %v381_v44 = vor.u32 %v446_v39, %v380_v38  ;;  %v372_v45 = vld [vmem:[#allocation8] sm:$0xf]  ;;  %v393_v47 = vor.u32 %v447_v41, %v390_v42  ;;  %v445_v48 = vld [vmem:[#allocation8 + $0x14] sm:$0xf] }
  0x20   :  { %272 = vmatpush.bf16.msra.mxu1 %v413_v15  ;;  %v444_v46 = vld [vmem:[#allocation8 + $0x4] sm:$0xf0]  ;;  %v382_v49 = vld [vmem:[#allocation8 + $0x18] sm:$0xf0]  ;;  %v435_v50 = vld [vmem:[#allocation7] sm:$0xff] }
  0x21   :  { %156 = vmatpush.bf16.msra.mxu0 %v439_v22  ;;  %v83_v51 = vld [vmem:[#allocation2] sm:$0xff]  ;;  %v373_v52 = vor.u32 %v444_v46, %v372_v45  ;;  %v166_v53 = vld [vmem:[#allocation5] sm:$0xff]  ;;  %v385_v54 = vor.u32 %v445_v48, %v382_v49  ;;  %v443_v56 = vld [vmem:[#allocation8 + $0x4] sm:$0xf] }
  0x22   :  { %285 = vmatpush.bf16.msra.mxu2 %v417_v26  ;;  %v84_v55 = vpack.c.bf16 %v83_v51, %v83_v51  ;;  %v374_v57 = vld [vmem:[#allocation8 + $0x8] sm:$0xf0]  ;;  %v167_v58 = vpack.c.bf16 %v166_v53, %v166_v53  ;;  %v184_v60 = vld [vmem:[%s671_s5] sm:$0x3] }
  0x23   :  { %v377_v59 = vor.u32 %v443_v56, %v374_v57  ;;  %v468_v61 = vld [vmem:[%s669_s3] ss:$0 sm:$0xff]  ;;  %v186_v62 = vperm.slane %v184_v60, 0  ;;  %v187_v13 = vperm.slane %v184_v60, 1  ;;  %s609_s3 = smov [#allocation10]  }
  0x24   :  { %273 = vmatpush.bf16.msra.mxu1 %v405_v23  ;;  %s324_s5 = sshll.u32 %s609_s3, 4  ;;  %s325_s5 = int_to_ptr.vmem [resolvable:$true] %s324_s5 }
  0x25   :  { %157 = vmatpush.bf16.msra.mxu0 %v438_v29 }
  0x26   :  { %286 = vmatpush.bf16.msra.mxu2 %v409_v33 }
  0x28   :  { %274 = vmatpush.bf16.msra.mxu1 %v397_v30 }
  0x29   :  { %158 = vmatpush.bf16.msra.mxu0 %v437_v36 }
  0x2a   :  { %287 = vmatpush.bf16.msra.mxu2 %v401_v40 }
  0x2c   :  { %275 = vmatpush.bf16.msra.mxu1 %v389_v37 }
  0x2d   :  { %159 = vmatpush.bf16.msra.mxu0 %v436_v43 }
  0x2e   :  { %288 = vmatpush.bf16.msra.mxu2 %v393_v47 }
  0x30   :  { %276 = vmatpush.bf16.msra.mxu1 %v381_v44 }
  0x31   :  { %160 = vmatpush.bf16.msra.mxu0 %v435_v50 }
  0x32   :  { %289 = vmatpush.bf16.msra.mxu2 %v385_v54 }
  0x34   :  { %277 = vmatpush.bf16.msra.mxu1 %v373_v52  ;;  %161 = vmatmul.bf16.vlgmr.msra.gmra.mxu0 %v84_v55 }
  0x36   :  { %290 = vmatpush.bf16.msra.mxu2 %v377_v59 }
  0x37   :  { %278 = vmatmul.bf16.vlgmr.msra.gmra.mxu1 %v167_v58 }
  0x39   :  { %291 = vmatmul.bf16.vlgmr.msra.gmra.mxu2 %v167_v58 }
  0xb1   :  { %v162_v63 = vpop.f32.mrf.mxu0 }
  0xb2   :  { %v163_v0 = vadd.f32 %v468_v61, %v162_v63 }
  0xb4   :  { %v279_v1 = vpop.f32.mrf.mxu1 }
  0xb5   :  { %v280_v2 = vadd.f32 %v279_v1, %v186_v62 }
  0xb7   :  { %v296_v3 = vmul.f32 %v280_v2, %v163_v0 }
  0xb9   :  { %v434_v4 = vmul.f32 -1.442695, %v296_v3  ;;  %v164_v5 = vpop.f32.mrf.mxu0 }
  0xbb   :  { %469 = vpow2.f32 %v434_v4 }
  0xbc   :  { %v281_v6 = vpop.f32.mrf.mxu1  ;;  %v292_v7 = vpop.f32.mrf.mxu2 }
  0xbd   :  { %v293_v18 = vadd.f32 %v292_v7, %v187_v13 }
  0xc1   :  { %v470_v8 = vpop.eup %469 }
  0xc2   :  { %v300_v9 = vadd.f32 1.0, %v470_v8 }
  0xc4   :  { %471 = vrcp.f32 %v300_v9  ;;  %v294_v10 = vpop.f32.mrf.mxu2  ;;  %v312_v15 = vand.u32 2147483648, %v300_v9  ;;  %v310_v17 = vand.u32 2147483647, %v300_v9  ;;  %vm306_vm1 = vweird.f32 %v300_v9 }
  0xc6   :  { %v313_v20 = vor.u32 1.1754944e-38, %v312_v15  ;;  %vm311_vm3 = vcmp.eq.f32.partialorder %v310_v17, 8.507059e+37 }
  0xca   :  { %v472_v11 = vpop.eup %471 }
  0xcb   :  { %v302_v12 = vmul.f32 %v472_v11, %v300_v9  ;;  %vm307_vm0 = vweird.f32 %v472_v11 }
  0xcc   :  { %vm308_vm2 = vmor %vm306_vm1, %vm307_vm0 }
  0xcd   :  { %v303_v14 = vsub.f32 1.0, %v302_v12 }
  0xcf   :  { %v304_v16 = vmul.f32 %v472_v11, %v303_v14 }
  0xd1   :  { %v305_v19 = vadd.f32 %v472_v11, %v304_v16 }
  0xd3   :  { %v309_v21 = vsel %vm308_vm2, %v472_v11, %v305_v19 }
  0xd4   :  { %v314_v22 = vsel %vm311_vm3, %v313_v20, %v309_v21 }
  0xd5   :  { %v316_v23 = vmul.f32 %v314_v22, %v293_v18 }
  0xd7   :  { %v317_v24 = vadd.f32 %v316_v23, %v83_v51 }
  0xd9   :  { %318 = vst [vmem:[#allocation10] sm:$0xff] %v317_v24 }
  0xda   :  { %329 = dma.vmem_to_hbm [thread:$0]  %s325_s5, 128, %s327_s23, [#allocation4]  }
  0xdb   :  { %599 = dma.done.wait [#allocation4], 128  }
  0xdc   :  { %600 = vsyncadd [#allocation4], 4294967168 }
  0xdd   :  { %334 = vsyncpa [#allocation3], 1 }
  0xde   :  { %335 = vsyncpa [#allocation6], 1 }
  0xdf   :  { %336 = vsyncpa [#allocation9], 1 }
  0xe0   :  { %337 = vsyncpa [#allocation4], 1 }

// kernel: tpu_custom_call.1
= control target key start
LH: loop header
LB: loop body
LE: loop exit
PB: predicated region body
PF: predicated region fallthrough
CT: control target
= control target key end

     0   :  { %11 = vsyncpa [#allocation3], 0  ;;  %s666_s0 = inlined_call_operand.hbm [shape: f32[8,128], index: 0, kind: input, shape index: {}]   ;;  %s667_s1 = inlined_call_operand.hbm [shape: f32[8,128], index: 1, kind: input, shape index: {}]   ;;  %s668_s2 = inlined_call_operand.hbm [shape: bf16[128,128], index: 2, kind: input, shape index: {}]   ;;  %s669_s3 = inlined_call_operand.vmem [shape: f32[1,128], index: 3, kind: input, shape index: {}]   ;;  %s670_s4 = inlined_call_operand.hbm [shape: bf16[128,256], index: 4, kind: input, shape index: {}]   ;;  %s671_s5 = inlined_call_operand.vmem [shape: f32[1,256], index: 5, kind: input, shape index: {}]   ;;  %s672_s6 = inlined_call_operand.hbm [shape: f32[8,128], index: 6, kind: output, shape index: {}]  }
   0x1   :  { %12 = vsyncpa [#allocation6], 0 }
   0x2   :  { %13 = vsyncpa [#allocation9], 0  ;;  %s31_s23 = sshll.u32 %s667_s1, 4  ;;  %s32_s23 = int_to_ptr.hbm [resolvable:$true] %s31_s23 }
   0x3   :  { %14 = vsyncpa [#allocation4], 0  ;;  %s601_s24 = smov [#allocation5]   ;;  %s20_s28 = sshll.u32 %s666_s0, 4  ;;  %s21_s28 = int_to_ptr.hbm [resolvable:$true] %s20_s28 }
   0x4   :  { %s33_s25 = sshll.u32 %s601_s24, 4  ;;  %s602_s29 = smov [#allocation2]   ;;  %s34_s25 = int_to_ptr.vmem [resolvable:$true] %s33_s25 }
   0x5   :  { %36 = dma.hbm_to_vmem [thread:$0]  %s32_s23, 128, %s34_s25, [#allocation6]  }
   0x6   :  { %s22_s30 = sshll.u32 %s602_s29, 4  ;;  %s41_s9 = sshll.u32 %s668_s2, 4  ;;  %s23_s30 = int_to_ptr.vmem [resolvable:$true] %s22_s30  ;;  %s42_s9 = int_to_ptr.hbm [resolvable:$true] %s41_s9 }
   0x7   :  { %25 = dma.hbm_to_vmem [thread:$0]  %s21_s28, 128, %s23_s30, [#allocation3]  }
   0x8   :  { %s603_s1 = smov [#allocation7]   ;;  %s56_s13 = sshll.u32 %s670_s4, 4  ;;  %s57_s13 = int_to_ptr.hbm [resolvable:$true] %s56_s13 }
   0x9   :  { %s43_s10 = sshll.u32 %s603_s1, 4  ;;  %s604_s14 = smov 64   ;;  %s44_s10 = int_to_ptr.vmem [resolvable:$true] %s43_s10 }
   0xa   :  { %s605_s0 = smov 4   ;;  %s606_s15 = smov [#allocation8]  }
   0xb   :  { %49 = dma.hbm_to_vmem [thread:$0]  %s42_s9, 1024, %s44_s10, [#allocation6], %s604_s14, %s604_s14, %s605_s0  }
   0xc   :  { %s58_s16 = sshll.u32 %s606_s15, 4  ;;  %s607_s17 = smov 128   ;;  %s59_s16 = int_to_ptr.vmem [resolvable:$true] %s58_s16 }
   0xd   :  { %s608_s18 = smov 8  }
   0xe   :  { %64 = dma.hbm_to_vmem [thread:$0]  %s57_s13, 2048, %s59_s16, [#allocation9], %s607_s17, %s607_s17, %s608_s18  }
   0xf   :  { %593 = dma.done.wait [#allocation3], 128  }
  0x10   :  { %594 = vsyncadd [#allocation3], 4294967168 }
  0x11   :  { %595 = dma.done.wait [#allocation6], 1152  }
  0x12   :  { %596 = vsyncadd [#allocation6], 4294966144 }
  0x13   :  { %597 = dma.done.wait [#allocation9], 2048  }
  0x14   :  { %598 = vsyncadd [#allocation9], 4294965248  ;;  %v442_v0 = vld [vmem:[#allocation7 + $0x38] sm:$0xff]  ;;  %v428_v1 = vld [vmem:[#allocation8 + $0x70] sm:$0xf]  ;;  %s326_s23 = sshll.u32 %s672_s6, 4  ;;  %s327_s23 = int_to_ptr.hbm [resolvable:$true] %s326_s23 }
  0x15   :  { %v458_v2 = vld [vmem:[#allocation8 + $0x74] sm:$0xf0]  ;;  %v420_v4 = vld [vmem:[#allocation8 + $0x60] sm:$0xf]  ;;  %v456_v5 = vld [vmem:[#allocation8 + $0x64] sm:$0xf0]  ;;  %153 = vmatpush.bf16.msra.mxu0 %v442_v0 }
  0x16   :  { %v429_v3 = vor.u32 %v458_v2, %v428_v1  ;;  %v441_v6 = vld [vmem:[#allocation7 + $0x30] sm:$0xff]  ;;  %v421_v7 = vor.u32 %v456_v5, %v420_v4  ;;  %v454_v9 = vld [vmem:[#allocation8 + $0x54] sm:$0xf0]  ;;  %v430_v11 = vld [vmem:[#allocation8 + $0x78] sm:$0xf0] }
  0x17   :  { %v412_v8 = vld [vmem:[#allocation8 + $0x50] sm:$0xf]  ;;  %v457_v10 = vld [vmem:[#allocation8 + $0x74] sm:$0xf]  ;;  %v440_v12 = vld [vmem:[#allocation7 + $0x28] sm:$0xff] }
  0x18   :  { %270 = vmatpush.bf16.msra.mxu1 %v429_v3  ;;  %v433_v13 = vor.u32 %v457_v10, %v430_v11  ;;  %v455_v14 = vld [vmem:[#allocation8 + $0x64] sm:$0xf]  ;;  %v413_v15 = vor.u32 %v454_v9, %v412_v8  ;;  %v422_v16 = vld [vmem:[#allocation8 + $0x68] sm:$0xf0]  ;;  %v404_v17 = vld [vmem:[#allocation8 + $0x40] sm:$0xf] }
  0x19   :  { %154 = vmatpush.bf16.msra.mxu0 %v441_v6  ;;  %v452_v18 = vld [vmem:[#allocation8 + $0x44] sm:$0xf0]  ;;  %v425_v19 = vor.u32 %v455_v14, %v422_v16  ;;  %v453_v20 = vld [vmem:[#allocation8 + $0x54] sm:$0xf]  ;;  %v414_v21 = vld [vmem:[#allocation8 + $0x58] sm:$0xf0] }
  0x1a   :  { %283 = vmatpush.bf16.msra.mxu2 %v433_v13  ;;  %v439_v22 = vld [vmem:[#allocation7 + $0x20] sm:$0xff]  ;;  %v405_v23 = vor.u32 %v452_v18, %v404_v17  ;;  %v396_v24 = vld [vmem:[#allocation8 + $0x30] sm:$0xf]  ;;  %v450_v25 = vld [vmem:[#allocation8 + $0x34] sm:$0xf0]  ;;  %v417_v26 = vor.u32 %v453_v20, %v414_v21 }
  0x1b   :  { %v451_v27 = vld [vmem:[#allocation8 + $0x44] sm:$0xf]  ;;  %v406_v28 = vld [vmem:[#allocation8 + $0x48] sm:$0xf0]  ;;  %v438_v29 = vld [vmem:[#allocation7 + $0x18] sm:$0xff]  ;;  %v397_v30 = vor.u32 %v450_v25, %v396_v24 }
  0x1c   :  { %271 = vmatpush.bf16.msra.mxu1 %v421_v7  ;;  %v388_v31 = vld [vmem:[#allocation8 + $0x20] sm:$0xf]  ;;  %v448_v32 = vld [vmem:[#allocation8 + $0x24] sm:$0xf0]  ;;  %v409_v33 = vor.u32 %v451_v27, %v406_v28  ;;  %v449_v34 = vld [vmem:[#allocation8 + $0x34] sm:$0xf] }
  0x1d   :  { %155 = vmatpush.bf16.msra.mxu0 %v440_v12  ;;  %v398_v35 = vld [vmem:[#allocation8 + $0x38] sm:$0xf0]  ;;  %v437_v36 = vld [vmem:[#allocation7 + $0x10] sm:$0xff]  ;;  %v389_v37 = vor.u32 %v448_v32, %v388_v31  ;;  %v446_v39 = vld [vmem:[#allocation8 + $0x14] sm:$0xf0] }
  0x1e   :  { %284 = vmatpush.bf16.msra.mxu2 %v425_v19  ;;  %v380_v38 = vld [vmem:[#allocation8 + $0x10] sm:$0xf]  ;;  %v401_v40 = vor.u32 %v449_v34, %v398_v35  ;;  %v447_v41 = vld [vmem:[#allocation8 + $0x24] sm:$0xf]  ;;  %v390_v42 = vld [vmem:[#allocation8 + $0x28] sm:$0xf0] }
  0x1f   :  { %v436_v43 = vld [vmem:[#allocation7 + $0x8] sm:$0xff]  ;;  %v381_v44 = vor.u32 %v446_v39, %v380_v38  ;;  %v372_v45 = vld [vmem:[#allocation8] sm:$0xf]  ;;  %v393_v47 = vor.u32 %v447_v41, %v390_v42  ;;  %v445_v48 = vld [vmem:[#allocation8 + $0x14] sm:$0xf] }
  0x20   :  { %272 = vmatpush.bf16.msra.mxu1 %v413_v15  ;;  %v444_v46 = vld [vmem:[#allocation8 + $0x4] sm:$0xf0]  ;;  %v382_v49 = vld [vmem:[#allocation8 + $0x18] sm:$0xf0]  ;;  %v435_v50 = vld [vmem:[#allocation7] sm:$0xff] }
  0x21   :  { %156 = vmatpush.bf16.msra.mxu0 %v439_v22  ;;  %v83_v51 = vld [vmem:[#allocation2] sm:$0xff]  ;;  %v373_v52 = vor.u32 %v444_v46, %v372_v45  ;;  %v166_v53 = vld [vmem:[#allocation5] sm:$0xff]  ;;  %v385_v54 = vor.u32 %v445_v48, %v382_v49  ;;  %v443_v56 = vld [vmem:[#allocation8 + $0x4] sm:$0xf] }
  0x22   :  { %285 = vmatpush.bf16.msra.mxu2 %v417_v26  ;;  %v84_v55 = vpack.c.bf16 %v83_v51, %v83_v51  ;;  %v374_v57 = vld [vmem:[#allocation8 + $0x8] sm:$0xf0]  ;;  %v167_v58 = vpack.c.bf16 %v166_v53, %v166_v53  ;;  %v184_v60 = vld [vmem:[%s671_s5] sm:$0x3] }
  0x23   :  { %v377_v59 = vor.u32 %v443_v56, %v374_v57  ;;  %v468_v61 = vld [vmem:[%s669_s3] ss:$0 sm:$0xff]  ;;  %v186_v62 = vperm.slane %v184_v60, 0  ;;  %v187_v13 = vperm.slane %v184_v60, 1  ;;  %s609_s3 = smov [#allocation10]  }
  0x24   :  { %273 = vmatpush.bf16.msra.mxu1 %v405_v23  ;;  %s324_s5 = sshll.u32 %s609_s3, 4  ;;  %s325_s5 = int_to_ptr.vmem [resolvable:$true] %s324_s5 }
  0x25   :  { %157 = vmatpush.bf16.msra.mxu0 %v438_v29 }
  0x26   :  { %286 = vmatpush.bf16.msra.mxu2 %v409_v33 }
  0x28   :  { %274 = vmatpush.bf16.msra.mxu1 %v397_v30 }
  0x29   :  { %158 = vmatpush.bf16.msra.mxu0 %v437_v36 }
  0x2a   :  { %287 = vmatpush.bf16.msra.mxu2 %v401_v40 }
  0x2c   :  { %275 = vmatpush.bf16.msra.mxu1 %v389_v37 }
  0x2d   :  { %159 = vmatpush.bf16.msra.mxu0 %v436_v43 }
  0x2e   :  { %288 = vmatpush.bf16.msra.mxu2 %v393_v47 }
  0x30   :  { %276 = vmatpush.bf16.msra.mxu1 %v381_v44 }
  0x31   :  { %160 = vmatpush.bf16.msra.mxu0 %v435_v50 }
  0x32   :  { %289 = vmatpush.bf16.msra.mxu2 %v385_v54 }
  0x34   :  { %277 = vmatpush.bf16.msra.mxu1 %v373_v52  ;;  %161 = vmatmul.bf16.vlgmr.msra.gmra.mxu0 %v84_v55 }
  0x36   :  { %290 = vmatpush.bf16.msra.mxu2 %v377_v59 }
  0x37   :  { %278 = vmatmul.bf16.vlgmr.msra.gmra.mxu1 %v167_v58 }
  0x39   :  { %291 = vmatmul.bf16.vlgmr.msra.gmra.mxu2 %v167_v58 }
  0xb1   :  { %v162_v63 = vpop.f32.mrf.mxu0 }
  0xb2   :  { %v163_v0 = vadd.f32 %v468_v61, %v162_v63 }
  0xb4   :  { %v279_v1 = vpop.f32.mrf.mxu1 }
  0xb5   :  { %v280_v2 = vadd.f32 %v279_v1, %v186_v62 }
  0xb7   :  { %v296_v3 = vmul.f32 %v280_v2, %v163_v0 }
  0xb9   :  { %v434_v4 = vmul.f32 -1.442695, %v296_v3  ;;  %v164_v5 = vpop.f32.mrf.mxu0 }
  0xbb   :  { %469 = vpow2.f32 %v434_v4 }
  0xbc   :  { %v281_v6 = vpop.f32.mrf.mxu1  ;;  %v292_v7 = vpop.f32.mrf.mxu2 }
  0xbd   :  { %v293_v18 = vadd.f32 %v292_v7, %v187_v13 }
  0xc1   :  { %v470_v8 = vpop.eup %469 }
  0xc2   :  { %v300_v9 = vadd.f32 1.0, %v470_v8 }
  0xc4   :  { %471 = vrcp.f32 %v300_v9  ;;  %v294_v10 = vpop.f32.mrf.mxu2  ;;  %v312_v15 = vand.u32 2147483648, %v300_v9  ;;  %v310_v17 = vand.u32 2147483647, %v300_v9  ;;  %vm306_vm1 = vweird.f32 %v300_v9 }
  0xc6   :  { %v313_v20 = vor.u32 1.1754944e-38, %v312_v15  ;;  %vm311_vm3 = vcmp.eq.f32.partialorder %v310_v17, 8.507059e+37 }
  0xca   :  { %v472_v11 = vpop.eup %471 }
  0xcb   :  { %v302_v12 = vmul.f32 %v472_v11, %v300_v9  ;;  %vm307_vm0 = vweird.f32 %v472_v11 }
  0xcc   :  { %vm308_vm2 = vmor %vm306_vm1, %vm307_vm0 }
  0xcd   :  { %v303_v14 = vsub.f32 1.0, %v302_v12 }
  0xcf   :  { %v304_v16 = vmul.f32 %v472_v11, %v303_v14 }
  0xd1   :  { %v305_v19 = vadd.f32 %v472_v11, %v304_v16 }
  0xd3   :  { %v309_v21 = vsel %vm308_vm2, %v472_v11, %v305_v19 }
  0xd4   :  { %v314_v22 = vsel %vm311_vm3, %v313_v20, %v309_v21 }
  0xd5   :  { %v316_v23 = vmul.f32 %v314_v22, %v293_v18 }
  0xd7   :  { %v317_v24 = vadd.f32 %v316_v23, %v83_v51 }
  0xd9   :  { %318 = vst [vmem:[#allocation10] sm:$0xff] %v317_v24 }
  0xda   :  { %329 = dma.vmem_to_hbm [thread:$0]  %s325_s5, 128, %s327_s23, [#allocation4]  }
  0xdb   :  { %599 = dma.done.wait [#allocation4], 128  }
  0xdc   :  { %600 = vsyncadd [#allocation4], 4294967168 }
  0xdd   :  { %334 = vsyncpa [#allocation3], 1 }
  0xde   :  { %335 = vsyncpa [#allocation6], 1 }
  0xdf   :  { %336 = vsyncpa [#allocation9], 1 }
  0xe0   :  { %337 = vsyncpa [#allocation4], 1 }

</bundles_post_ra>
